<compile_context>
chip_gen: v7x
topology: tpu7x:2x2x1
jax: 0.10.0
libtpu: 0.0.40
codegen_flags: <defaults>
</compile_context>

<pallas_src>
import functools
from typing import NamedTuple

import jax
import jax.numpy as jnp
from jax.experimental import pallas as pl
from jax.experimental.pallas import tpu as pltpu


_PAD_BIAS = -1e30  # bias for padded vocab columns -> exp() underflows to 0


def _round_up(x, m):
    return ((x + m - 1) // m) * m


def _pick_tv(V):
    if V >= 1024:
        return 1024
    return _round_up(max(V, 128), 128)


# --------------------------- weight preparation (hoisted) ---------------------------
class GeneratorParams(NamedTuple):
    w: jax.Array   # (d_model, V_pad), matmul dtype (bf16 by default)
    b: jax.Array   # (1, V_pad) float32; padded columns carry _PAD_BIAS
    vocab: int     # original (unpadded) vocab size


def prepare_generator_params(w, b, *, matmul_dtype=jnp.bfloat16):
    """Pad + cast the projection weights ONCE (hoisted out of the per-call path).

    w: (d_model, vocab)  (transposed vs. PyTorch nn.Linear's (vocab, d_model))
    b: (vocab,)
    """
    D, V = w.shape
    tv = _pick_tv(V)
    V_pad = _round_up(V, tv)
    w_p = w if V_pad == V else jnp.pad(w, ((0, 0), (0, V_pad - V)))
    w_p = w_p.astype(matmul_dtype)
    b_p = b if V_pad == V else jnp.pad(b, (0, V_pad - V), constant_values=_PAD_BIAS)
    b_p = b_p.reshape(1, V_pad).astype(jnp.float32)
    return GeneratorParams(w=w_p, b=b_p, vocab=V)


# ----------------------------------- fused kernel -----------------------------------
def _generator_kernel(x_ref, w_ref, b_ref, o_ref, stripe_ref, m_sc, l_sc, *, tv):
    p = pl.program_id(1)           # 0: logits + online LSE sweep, 1: normalize sweep
    j = pl.program_id(2)           # vocab tile
    nj = pl.num_programs(2)
    col0 = pl.multiple_of(j * tv, 128)

    @pl.when(p == 0)
    def _logits_and_lse():
        @pl.when(j == 0)
        def _init():
            m_sc[...] = jnp.full_like(m_sc, -jnp.inf)
            l_sc[...] = jnp.zeros_like(l_sc)

        # bf16 inputs, f32 accumulation on the MXU.
        logits = jnp.dot(x_ref[...], w_ref[...], preferred_element_type=jnp.float32)
        logits = logits + b_ref[...]
        # Keep this vocab slice of the logits resident in VMEM (no HBM round trip).
        stripe_ref[:, pl.ds(col0, tv)] = logits.astype(stripe_ref.dtype)

        # Online log-sum-exp across vocab tiles (running max + rescaled sum).
        m_prev = m_sc[...]
        m_new = jnp.maximum(m_prev, jnp.max(logits, axis=-1, keepdims=True))
        l_sc[...] = (l_sc[...] * jnp.exp(m_prev - m_new)
                     + jnp.sum(jnp.exp(logits - m_new), axis=-1, keepdims=True))
        m_sc[...] = m_new

        @pl.when(j == nj - 1)
        def _to_lse():
            m_sc[...] = m_sc[...] + jnp.log(l_sc[...])   # m_sc now holds the row lse

    @pl.when(p == 1)
    def _normalize():
        logits = stripe_ref[:, pl.ds(col0, tv)].astype(jnp.float32)
        o_ref[...] = (logits - m_sc[...]).astype(o_ref.dtype)


# -------------------------------------- wrapper --------------------------------------
def generator_forward(x2d, w_p, b_p, *, vocab=None, out_dtype=jnp.float32):
    """x2d: (M, d_model); w_p: (d_model, V_pad); b_p: (1, V_pad) f32 (use
    prepare_generator_params).  Returns log_softmax(x @ W + b) of shape (M, vocab)."""
    M, D = x2d.shape
    Dw, V_pad = w_p.shape
    assert Dw == D
    V = V_pad if vocab is None else vocab

    tv = _pick_tv(V_pad)
    assert V_pad % tv == 0, "pass weights through prepare_generator_params()"
    nj = V_pad // tv

    # Row tile: big for the MXU; for small (decode-style) M make >= 2 tiles so the
    # "parallel" M axis can use both TensorCores on v7x.
    if M >= 512:
        tm = 512
    elif M >= 256:
        tm = 256
    elif M > 8:
        tm = _round_up(-(-M // 2), 8)
    else:
        tm = 8

    # VMEM logits stripe: f32 when it fits the budget, else bf16, else shrink tm.
    stripe_budget = 28 * 1024 * 1024          # leaves headroom inside v7x's 64 MiB VMEM
    stripe_dtype = jnp.float32
    if tm * V_pad * 4 > stripe_budget:
        stripe_dtype = jnp.bfloat16
    while tm > 16 and tm * V_pad * jnp.dtype(stripe_dtype).itemsize > stripe_budget:
        tm = _round_up(tm // 2, 8)
    # TODO(synk): for vocabs so large that even a small-tm bf16 stripe overflows VMEM,
    # fall back to a two-pass variant with a bf16 HBM intermediate.

    M_pad = _round_up(M, tm)
    ni = M_pad // tm
    x_p = x2d if M_pad == M else jnp.pad(x2d, ((0, M_pad - M), (0, 0)))
    x_p = x_p.astype(w_p.dtype)

    # Scoped-VMEM budget: single-counted buffers + headroom, capped below physical VMEM.
    in_bytes = jnp.dtype(w_p.dtype).itemsize
    out_bytes = jnp.dtype(out_dtype).itemsize
    est = (2 * tm * D * in_bytes                                   # x tile (double buf)
           + 2 * D * tv * in_bytes                                 # weight tile
           + 2 * tv * 4                                            # bias tile
           + 2 * tm * tv * out_bytes                               # output tile
           + tm * V_pad * jnp.dtype(stripe_dtype).itemsize         # logits stripe
           + 2 * tm * 4)                                           # m / l scratch
    try:
        vmem_cap = int(pltpu.get_tpu_info().vmem_capacity_bytes)
    except Exception:
        vmem_cap = 64 * 1024 * 1024
    vmem_limit = max(est + 8 * 1024 * 1024, 32 * 1024 * 1024)
    vmem_limit = int(min(vmem_limit, int(0.85 * vmem_cap)))

    # Index maps: weights/bias are pinned to the last vocab tile during the normalize
    # sweep (p=1) so they are streamed exactly once per row tile; the output block is
    # pinned to (i, 0) during p=0 so no output DMA happens until real data is written.
    x_map = lambda i, p, j: (i, 0)
    w_map = lambda i, p, j: (0, j * (1 - p) + (nj - 1) * p)
    o_map = lambda i, p, j: (i, j * p)

    out = pl.pallas_call(
        functools.partial(_generator_kernel, tv=tv),
        out_shape=jax.ShapeDtypeStruct((M_pad, V_pad), out_dtype),
        grid_spec=pltpu.PrefetchScalarGridSpec(
            num_scalar_prefetch=0,
            grid=(ni, 2, nj),
            in_specs=[
                pl.BlockSpec((tm, D), x_map),
                pl.BlockSpec((D, tv), w_map),
                pl.BlockSpec((1, tv), w_map),
            ],
            out_specs=pl.BlockSpec((tm, tv), o_map),
            scratch_shapes=[
                pltpu.VMEM((tm, V_pad), stripe_dtype),   # logits stripe
                pltpu.VMEM((tm, 1), jnp.float32),        # running max -> lse
                pltpu.VMEM((tm, 1), jnp.float32),        # running sum-exp
            ],
        ),
        compiler_params=pltpu.CompilerParams(
            dimension_semantics=("parallel", "arbitrary", "arbitrary"),
            vmem_limit_bytes=vmem_limit,
        ),
    )(x_p, w_p, b_p)

    if M_pad != M or V_pad != V:
        out = out[:M, :V]
    return out


def generator(x, w, b, *, out_dtype=jnp.float32):
    """x: (..., d_model), w: (d_model, vocab), b: (vocab,) ->
    log_softmax(x @ W + b) over the last dim, shape (..., vocab)."""
    params = prepare_generator_params(w, b)
    lead = x.shape[:-1]
    x2d = x.reshape(-1, x.shape[-1])
    out = generator_forward(x2d, params.w, params.b, vocab=params.vocab,
                            out_dtype=out_dtype)
    return out.reshape(*lead, params.vocab)


# ---------------------------------------- demo ----------------------------------------
if __name__ == "__main__":
    def run_case(batch, seq, d_model, vocab, key):
        kx, kw, kb = jax.random.split(key, 3)
        # PyTorch nn.Linear(d_model, vocab): weight (vocab, d_model), bias (vocab,).
        w_torch = jax.random.normal(kw, (vocab, d_model), dtype=jnp.float32) * 0.02
        b = jax.random.normal(kb, (vocab,), dtype=jnp.float32) * 0.02
        x = jax.random.normal(kx, (batch, seq, d_model), dtype=jnp.float32)

        # Weight pad + bf16 cast are done ONCE, outside the jitted per-call path.
        params = prepare_generator_params(w_torch.T, b)

        @jax.jit
        def fwd(x, w_p, b_p):
            x2d = x.reshape(-1, d_model)
            out = generator_forward(x2d, w_p, b_p, vocab=vocab)
            return out.reshape(batch, seq, vocab)

        out = jax.block_until_ready(fwd(x, params.w, params.b))

        # Reference mirrors the in-kernel bf16 matmul inputs (f32 accumulation).
        xr = x.astype(jnp.bfloat16).astype(jnp.float32)
        wr = w_torch.T.astype(jnp.bfloat16).astype(jnp.float32)
        ref = jax.nn.log_softmax(xr @ wr + b, axis=-1)

        assert out.shape == (batch, seq, vocab)
        err = float(jnp.max(jnp.abs(out - ref)))
        assert jnp.allclose(out, ref, atol=1e-4, rtol=1e-4), err

    key = jax.random.PRNGKey(0)
    k1, k2 = jax.random.split(key)
    run_case(batch=2, seq=8, d_model=32, vocab=128, key=k1)   # tile-exact shapes
    run_case(batch=3, seq=5, d_model=48, vocab=200, key=k2)   # exercises row + vocab padding
    print("KERNEL_OK")
</pallas_src>

<mosaic_0001>
module attributes {stable_mosaic.version = 11 : i64} {
  func.func @_generator_kernel(%arg0: i32, %arg1: i32, %arg2: i32, %arg3: memref<8x32xbf16, #tpu.memory_space<vmem>>, %arg4: memref<32x128xbf16, #tpu.memory_space<vmem>>, %arg5: memref<1x128xf32, #tpu.memory_space<vmem>>, %arg6: memref<8x128xf32, #tpu.memory_space<vmem>>, %arg7: memref<8x128xf32, #tpu.memory_space<vmem>>, %arg8: memref<8x1xf32, #tpu.memory_space<vmem>>, %arg9: memref<8x1xf32, #tpu.memory_space<vmem>>) attributes {dimension_semantics = [#tpu.dimension_semantics<parallel>, #tpu.dimension_semantics<arbitrary>, #tpu.dimension_semantics<arbitrary>], iteration_bounds = array<i64: 2, 2, 1>, scalar_prefetch = 0 : i64, scratch_operands = 3 : i64, tpu.core_type = #tpu.core_type<tc>, window_params = [{transform_indices = @transform_0, window_bounds = array<i64: 8, 32>}, {transform_indices = @transform_1, window_bounds = array<i64: 32, 128>}, {transform_indices = @transform_2, window_bounds = array<i64: 1, 128>}, {transform_indices = @transform_3, window_bounds = array<i64: 8, 128>}]} {
    %c128_i32 = arith.constant 128 : i32
    %0 = arith.muli %arg2, %c128_i32 : i32
    %1 = tpu.assume_multiple %0, 128 : i32
    %c0_i32 = arith.constant 0 : i32
    %2 = arith.cmpi eq, %arg1, %c0_i32 : i32
    %3 = arith.extui %2 : i1 to i32
    %c0_i32_0 = arith.constant 0 : i32
    %4 = arith.cmpi ne, %3, %c0_i32_0 : i32
    scf.if %4 {
      %c0_i32_2 = arith.constant 0 : i32
      %8 = arith.cmpi eq, %arg2, %c0_i32_2 : i32
      %9 = arith.extui %8 : i1 to i32
      %c0_i32_3 = arith.constant 0 : i32
      %10 = arith.cmpi ne, %9, %c0_i32_3 : i32
      scf.if %10 {
        %cst_22 = arith.constant 0xFF800000 : f32
        %38 = vector.broadcast %cst_22 : f32 to vector<8x1xf32>
        %c0_23 = arith.constant 0 : index
        %c0_24 = arith.constant 0 : index
        %39 = vector.load %arg8[%c0_23, %c0_24] : memref<8x1xf32, #tpu.memory_space<vmem>>, vector<8x1xf32>
        tpu.vector_store %arg8[%c0_23, %c0_24], %38 {strides = array<i32>} : memref<8x1xf32, #tpu.memory_space<vmem>>, vector<8x1xf32>,
        %cst_25 = arith.constant 0.000000e+00 : f32
        %40 = vector.broadcast %cst_25 : f32 to vector<8x1xf32>
        %c0_26 = arith.constant 0 : index
        %c0_27 = arith.constant 0 : index
        %41 = vector.load %arg9[%c0_26, %c0_27] : memref<8x1xf32, #tpu.memory_space<vmem>>, vector<8x1xf32>
        tpu.vector_store %arg9[%c0_26, %c0_27], %40 {strides = array<i32>} : memref<8x1xf32, #tpu.memory_space<vmem>>, vector<8x1xf32>,
      } else {
      }
      %c0 = arith.constant 0 : index
      %c0_4 = arith.constant 0 : index
      %11 = vector.load %arg3[%c0, %c0_4] : memref<8x32xbf16, #tpu.memory_space<vmem>>, vector<8x32xbf16>
      %c0_5 = arith.constant 0 : index
      %c0_6 = arith.constant 0 : index
      %12 = vector.load %arg4[%c0_5, %c0_6] : memref<32x128xbf16, #tpu.memory_space<vmem>>, vector<32x128xbf16>
      %cst = arith.constant dense<0.000000e+00> : vector<8x128xf32>
      %13 = tpu.matmul %11, %12, %cst {dimension_numbers = #tpu.dot_dimension_numbers<[1], [0], [0], [1], [0, 0, 1, 1], [], []>} : vector<8x32xbf16>, vector<32x128xbf16>, vector<8x128xf32> -> vector<8x128xf32>
      %c0_7 = arith.constant 0 : index
      %c0_8 = arith.constant 0 : index
      %14 = vector.load %arg5[%c0_7, %c0_8] : memref<1x128xf32, #tpu.memory_space<vmem>>, vector<1x128xf32>
      %15 = vector.broadcast %14 : vector<1x128xf32> to vector<8x128xf32>
      %16 = arith.addf %13, %15 : vector<8x128xf32>
      %c0_9 = arith.constant 0 : index
      %17 = arith.index_cast %1 : i32 to index
      %18 = vector.load %arg7[%c0_9, %17] : memref<8x128xf32, #tpu.memory_space<vmem>>, vector<8x128xf32>
      tpu.vector_store %arg7[%c0_9, %17], %16 {strides = array<i32>} : memref<8x128xf32, #tpu.memory_space<vmem>>, vector<8x128xf32>,
      %c0_10 = arith.constant 0 : index
      %c0_11 = arith.constant 0 : index
      %19 = vector.load %arg8[%c0_10, %c0_11] : memref<8x1xf32, #tpu.memory_space<vmem>>, vector<8x1xf32>
      %cst_12 = arith.constant dense<0xFF800000> : vector<8xf32>
      %20 = vector.multi_reduction <maximumf>, %16, %cst_12 [1] : vector<8x128xf32> to vector<8xf32>
      %21 = vector.shape_cast %20 : vector<8xf32> to vector<8x1xf32>
      %22 = arith.maximumf %19, %21 : vector<8x1xf32>
      %c0_13 = arith.constant 0 : index
      %c0_14 = arith.constant 0 : index
      %23 = vector.load %arg9[%c0_13, %c0_14] : memref<8x1xf32, #tpu.memory_space<vmem>>, vector<8x1xf32>
      %24 = arith.subf %19, %22 : vector<8x1xf32>
      %25 = math.exp %24 : vector<8x1xf32>
      %26 = arith.mulf %23, %25 : vector<8x1xf32>
      %27 = vector.broadcast %22 : vector<8x1xf32> to vector<8x128xf32>
      %28 = arith.subf %16, %27 : vector<8x128xf32>
      %29 = math.exp %28 : vector<8x128xf32>
      %cst_15 = arith.constant dense<0.000000e+00> : vector<8xf32>
      %30 = vector.multi_reduction <add>, %29, %cst_15 [1] : vector<8x128xf32> to vector<8xf32>
      %31 = vector.shape_cast %30 : vector<8xf32> to vector<8x1xf32>
      %32 = arith.addf %26, %31 : vector<8x1xf32>
      %c0_16 = arith.constant 0 : index
      %c0_17 = arith.constant 0 : index
      %33 = vector.load %arg9[%c0_16, %c0_17] : memref<8x1xf32, #tpu.memory_space<vmem>>, vector<8x1xf32>
      tpu.vector_store %arg9[%c0_16, %c0_17], %32 {strides = array<i32>} : memref<8x1xf32, #tpu.memory_space<vmem>>, vector<8x1xf32>,
      %c0_18 = arith.constant 0 : index
      %c0_19 = arith.constant 0 : index
      %34 = vector.load %arg8[%c0_18, %c0_19] : memref<8x1xf32, #tpu.memory_space<vmem>>, vector<8x1xf32>
      tpu.vector_store %arg8[%c0_18, %c0_19], %22 {strides = array<i32>} : memref<8x1xf32, #tpu.memory_space<vmem>>, vector<8x1xf32>,
      %c0_i32_20 = arith.constant 0 : i32
      %35 = arith.cmpi eq, %arg2, %c0_i32_20 : i32
      %36 = arith.extui %35 : i1 to i32
      %c0_i32_21 = arith.constant 0 : i32
      %37 = arith.cmpi ne, %36, %c0_i32_21 : i32
      scf.if %37 {
        %c0_22 = arith.constant 0 : index
        %c0_23 = arith.constant 0 : index
        %38 = vector.load %arg8[%c0_22, %c0_23] : memref<8x1xf32, #tpu.memory_space<vmem>>, vector<8x1xf32>
        %c0_24 = arith.constant 0 : index
        %c0_25 = arith.constant 0 : index
        %39 = vector.load %arg9[%c0_24, %c0_25] : memref<8x1xf32, #tpu.memory_space<vmem>>, vector<8x1xf32>
        %40 = math.log %39 : vector<8x1xf32>
        %41 = arith.addf %38, %40 : vector<8x1xf32>
        %c0_26 = arith.constant 0 : index
        %c0_27 = arith.constant 0 : index
        %42 = vector.load %arg8[%c0_26, %c0_27] : memref<8x1xf32, #tpu.memory_space<vmem>>, vector<8x1xf32>
        tpu.vector_store %arg8[%c0_26, %c0_27], %41 {strides = array<i32>} : memref<8x1xf32, #tpu.memory_space<vmem>>, vector<8x1xf32>,
      } else {
      }
    } else {
    }
    %c1_i32 = arith.constant 1 : i32
    %5 = arith.cmpi eq, %arg1, %c1_i32 : i32
    %6 = arith.extui %5 : i1 to i32
    %c0_i32_1 = arith.constant 0 : i32
    %7 = arith.cmpi ne, %6, %c0_i32_1 : i32
    scf.if %7 {
      %c0 = arith.constant 0 : index
      %8 = arith.index_cast %1 : i32 to index
      %9 = vector.load %arg7[%c0, %8] : memref<8x128xf32, #tpu.memory_space<vmem>>, vector<8x128xf32>
      %c0_2 = arith.constant 0 : index
      %c0_3 = arith.constant 0 : index
      %10 = vector.load %arg8[%c0_2, %c0_3] : memref<8x1xf32, #tpu.memory_space<vmem>>, vector<8x1xf32>
      %11 = vector.broadcast %10 : vector<8x1xf32> to vector<8x128xf32>
      %12 = arith.subf %9, %11 : vector<8x128xf32>
      %c0_4 = arith.constant 0 : index
      %c0_5 = arith.constant 0 : index
      %13 = vector.load %arg6[%c0_4, %c0_5] : memref<8x128xf32, #tpu.memory_space<vmem>>, vector<8x128xf32>
      tpu.vector_store %arg6[%c0_4, %c0_5], %12 {strides = array<i32>} : memref<8x128xf32, #tpu.memory_space<vmem>>, vector<8x128xf32>,
    } else {
    }
    return
  }
  func.func @transform_0(%arg0: i32, %arg1: i32, %arg2: i32) -> (i32, i32) {
    %c0_i32 = arith.constant 0 : i32
    %c0_i32_0 = arith.constant 0 : i32
    return %arg0, %c0_i32 : i32, i32
  }
  func.func @transform_1(%arg0: i32, %arg1: i32, %arg2: i32) -> (i32, i32) {
    %c1_i32 = arith.constant 1 : i32
    %0 = arith.subi %c1_i32, %arg1 : i32
    %1 = arith.muli %arg2, %0 : i32
    %c0_i32 = arith.constant 0 : i32
    %2 = arith.muli %c0_i32, %arg1 : i32
    %3 = arith.addi %1, %2 : i32
    %c0_i32_0 = arith.constant 0 : i32
    %c0_i32_1 = arith.constant 0 : i32
    return %c0_i32_0, %3 : i32, i32
  }
  func.func @transform_2(%arg0: i32, %arg1: i32, %arg2: i32) -> (i32, i32) {
    %c1_i32 = arith.constant 1 : i32
    %0 = arith.subi %c1_i32, %arg1 : i32
    %1 = arith.muli %arg2, %0 : i32
    %c0_i32 = arith.constant 0 : i32
    %2 = arith.muli %c0_i32, %arg1 : i32
    %3 = arith.addi %1, %2 : i32
    %c0_i32_0 = arith.constant 0 : i32
    %c0_i32_1 = arith.constant 0 : i32
    return %c0_i32_0, %3 : i32, i32
  }
  func.func @transform_3(%arg0: i32, %arg1: i32, %arg2: i32) -> (i32, i32) {
    %0 = arith.muli %arg2, %arg1 : i32
    %c0_i32 = arith.constant 0 : i32
    return %arg0, %0 : i32, i32
  }
}

</mosaic_0001>

<bundles_post_ra>
// kernel: fwd.1
= control target key start
LH: loop header
LB: loop body
LE: loop exit
PB: predicated region body
PF: predicated region fallthrough
CT: control target
= control target key end

     0   :  { %8 = vsyncpa [#allocation6], 0  ;;  %s886_s0 = inlined_call_operand.vmem [shape: bf16[16,32], index: 0, kind: input, shape index: {}]   ;;  %s887_s1 = inlined_call_operand.vmem [shape: bf16[32,128], index: 1, kind: input, shape index: {}]   ;;  %s888_s2 = inlined_call_operand.vmem [shape: f32[1,128], index: 2, kind: input, shape index: {}]   ;;  %s889_s3 = inlined_call_operand.hbm [shape: f32[16,128], index: 3, kind: output, shape index: {}]  }
   0x1   :  { %10 = vsyncpa [#allocation6 + $0x1], 0  ;;  %s733_s12 = smov 0   ;;  %s735_s13 = smov 0  }
   0x2   :  { %s737_s14 = smov 0   ;;  %s739_s15 = smov 0  }
   0x3   :  { %s741_s16 = smov 0   ;;  %s743_s17 = smov 0  }
   0x4   :  { %s745_s18 = smov 0   ;;  %s747_s19 = smov 0  }
   0x5 LB: > { %s495_s20 = sadd.s32 4294967295, %s705_s19   ;;  %s496_s21 = sadd.s32 4294967294, %s705_s19   ;;  %s705_s19 = sphi %s747_s19, %s16_s19   ;;  %s701_s18 = sphi %s745_s18, %s898_s18   ;;  %s697_s17 = sphi %s743_s17, %s897_s17   ;;  %s693_s16 = sphi %s741_s16, %s896_s16   ;;  %s689_s15 = sphi %s739_s15, %s895_s15   ;;  %s685_s14 = sphi %s737_s14, %s894_s14   ;;  %s681_s13 = sphi %s735_s13, %s893_s13   ;;  %s677_s12 = sphi %s733_s12, %s892_s12  }
   0x6   : > { %s31_s22 = sadd.s32 1, %s697_s17  ;;  %s35_s23 = sadd.s32 1, %s701_s18 }
   0x7   : > { %p33_p0 = scmp.ge.s32.totalorder %s31_s22, 2  ;;  %p142_p1 = scmp.ne.s32.totalorder %s685_s14, %s681_s13 }
   0x8   : > { %p143_p2 = scmp.eq.s32.totalorder %s495_s20, 3  ;;  %p148_p4 = scmp.ne.s32.totalorder %s681_s13, %s677_s12 }
   0x9   : > { %s900_s22 = smov (%p33_p0, %s31_s22), 0  ;;  %s902_s23 = smov (!%p33_p0, %s35_s23), %s701_s18 }
   0xa   : > { %p782_p3 = por %p143_p2, %p142_p1  ;;  %p37_p5 = scmp.ge.s32.totalorder %s902_s23, 2 }
   0xb   : > { %p149_p6 = scmp.eq.s32.totalorder %s496_s21, 3  ;;  %p501_p7 = scmp.ge.s32.totalorder %s705_s19, 1 }
   0xc   : > { %p195_p8 = scmp.lt.s32.totalorder %s705_s19, 5  ;;  %s904_s23 = smov (%p37_p5, %s902_s23), 0 }
   0xd   : > { %p792_p9 = por %p149_p6, %p148_p4  ;;  %s127_s26 = ssub.s32 %s701_s18, %s904_s23 }
   0xe   : > { %p196_p10 = pnand %p501_p7, %p195_p8  ;;  %s132_s27 = sadd.s32 1, %s685_s14 }
   0xf   : > { %p130_p11 = scmp.eq.s32.totalorder %s127_s26, 0  ;;  %s226_s29 = sand.u32 (!%p196_p10), 1, %s681_s13  }
  0x10   : > { %199 = sbr.rel (%p196_p10) target bundleno = 864 (0x360), region = 32  ;;  %p229_p12 = scmp.lt.s32.totalorder (!%p196_p10), %s693_s16, 1 }
  0x11   : > { %s800_s28 = scalar_select %p130_p11, %s685_s14, %s132_s27  }
  0x12   : > { %s806_s30 = sshll.u32 (!%p196_p10), %s226_s29, 3  ;;  %p504_p13 = scmp.ne.s32.totalorder (!%p196_p10), %s689_s15, 0 }
  0x13   : > { %s228_s9 = scalar_lea.vmem (!%p196_p10), [#allocation5], %s806_s30 }
  0x17   : > { %s230_s4 = scalar_select %p229_p12, %s693_s16, 1 }
  0x18   : > { %254 = sbr.rel (%p504_p13) target bundleno = 702 (0x2be), region = 36  ;;  %vm259_vm0 = vcmask (!%p504_p13), 7168   ;;  %v707_v0 = vmov (!%p504_p13), 0.0   ;;  %v602_v1 = vld [vmem:[%s887_s1] sm:$0xff] (!%p504_p13)   ;;  %vm708_vm1 = vmmov (!%p504_p13), 0   ;;  %v603_v2 = vld [vmem:[%s887_s1 + $0x8] sm:$0xff] (!%p504_p13)  }
  0x19   : > { %s503_s5 = sshll.u32 %s230_s4, 2  ;;  %261 = vst.msk [vmem:[#allocation4] sm:$0xff] (!%p504_p13), %vm259_vm0, %v707_v0  ;;  %517 = vmatprep.subr.bf16.mxu0 (!%p504_p13), %v707_v0  ;;  %521 = vmatprep.mubr.msk.bf16.mxu0 (!%p504_p13), %vm708_vm1, %v707_v0  ;;  %vm286_vm2 = vcmask (!%p504_p13), 261120   ;;  %v505_v4 = vld [vmem:[%s888_s2] ss:$0 sm:$0xff] (!%p504_p13)  ;;  %v709_v10 = vmov (!%p504_p13), -inf  }
  0x1a   : > { %s232_s8 = scalar_lea.vmem %s886_s0, %s503_s5  ;;  %518 = vmatpush3.bf16.msra.mxu0 (!%p504_p13), %v602_v1  ;;  %260 = vst.msk [vmem:[#allocation3] sm:$0xff] (!%p504_p13), %vm259_vm0, %v709_v10  ;;  %v710_v11 = vmov (!%p504_p13), 0  }
  0x1b   : > { %519 = vmatprep.subr.bf16.mxu0 (!%p504_p13), %v707_v0  ;;  %v262_v3 = vld [vmem:[%s232_s8] sm:$0xf] (!%p504_p13)  ;;  %601 = vset.pattern.permute.xlu0 (!%p504_p13), %v710_v11 }
  0x1e   : > { %520 = vmatpush3.bf16.msra.mxu0 (!%p504_p13), %v603_v2 }
  0x20   : > { %v338_v22 = vld [vmem:[#allocation4] sm:$0xff] }
  0x21   : > { %522 = vmatmul.mubr.msk.bf16.vlgmr.msra.gmra.mrb[0].mxu0 %vm286_vm2, %v262_v3  ;;  %v334_v12 = vld [vmem:[#allocation3] sm:$0xff] }
  0xf4   : > { %v324_v5 = vpop.f32.mrb[0].mxu0 }
  0xf5   : > { %v325_v6 = vadd.f32 %v505_v4, %v324_v5  ;;  %v523_v7 = vpop.f32.mrb[1].mxu0 }
  0xf6   : > { %v327_v8 = vpop.f32.mrb[2].mxu0 }
  0xf7   : > { %333 = vst [vmem:[#allocation2] sm:$0xff] %v325_v6  ;;  %335 = vmax.xlane.f32.xlu0 %v325_v6  ;;  %v524_v9 = vpop.f32.mrb[3].mxu0 }
 0x184   : > { %v336_v13 = vpop.xlane.xlu0 %335 }
 0x185   : > { %v337_v14 = vmax.f32 %v334_v12, %v336_v13 }
 0x187   : > { %v339_v15 = vsub.f32 %v334_v12, %v337_v14  ;;  %356 = vst.msk [vmem:[#allocation3] sm:$0xff] %vm259_vm0, %v337_v14  ;;  %345 = vperm.xlu0 %601, %v337_v14  }
 0x189   : > { %v340_v20 = vmul.f32 1.442695, %v339_v15 }
 0x18e   : > { %v360_v29 = vld [vmem:[#allocation3] sm:$0xff] }
 0x206   : > { %v346_v16 = vpop.permute.xlu0 %345 }
 0x207   : > { %v348_v17 = vsub.f32 %v325_v6, %v346_v16 }
 0x209   : > { %v349_v18 = vmul.f32 1.442695, %v348_v17 }
 0x20b   : > { %604 = vpow2.f32 %v349_v18 }
 0x20c   : > { %606 = vpow2.f32 %v340_v20 }
 0x215   : > { %v605_v19 = vpop.eup %604 }
 0x216   : > { %351 = vadd.xlane.f32.xlu1 %v605_v19  ;;  %v607_v21 = vpop.eup %606 }
 0x217   : > { %v342_v23 = vmul.f32 %v607_v21, %v338_v22 }
 0x2a3   : > { %v352_v24 = vpop.xlane.xlu1 %351 }
 0x2a4   : > { %v353_v25 = vadd.f32 %v352_v24, %v342_v23 }
 0x2a6   : > { %355 = vst.msk [vmem:[#allocation4] sm:$0xff] %vm259_vm0, %v353_v25 }
 0x2ad   : > { %v361_v26 = vld [vmem:[#allocation4] sm:$0xff] }
 0x2ae   : > { %608 = vlog2.f32 %v361_v26 }
 0x2b8   : > { %v609_v27 = vpop.eup %608 }
 0x2b9   : > { %v363_v28 = vmul.f32 0.6931472, %v609_v27 }
 0x2bb   : > { %v364_v30 = vadd.f32 %v363_v28, %v360_v29 }
 0x2bd   : > { %365 = vst.msk [vmem:[#allocation3] sm:$0xff] %vm259_vm0, %v364_v30 }
 0x2be PF: > { %p509_p0 = scmp.ne.s32.totalorder %s689_s15, 1 }
 0x2bf   : > { %v711_v32 = vmov (!%p509_p0), 0   ;;  %v373_v33 = vld [vmem:[#allocation2] sm:$0xff] (!%p509_p0) }
 0x2c0   : > { %369 = sbr.rel (%p509_p0) target bundleno = 840 (0x348), region = 48  ;;  %610 = vset.pattern.permute.xlu0 (!%p509_p0), %v711_v32 }
 0x2c4   : > { %v374_v31 = vld [vmem:[#allocation3] sm:$0xff] (!%p509_p0) }
 0x2c5   : > { %377 = vperm.xlu0 (!%p509_p0), %610, %v374_v31  }
 0x344   : > { %v378_v34 = vpop.permute.xlu0 %377 }
 0x345   : > { %v380_v35 = vsub.f32 %v373_v33, %v378_v34 }
 0x347   : > { %381 = vst [vmem:[%s228_s9] sm:$0xff] %v380_v35 }
 0x348 PF: > { %s511_s4 = sshll.u32 %s693_s16, 7  ;;  %s398_s7 = sshll.u32 %s228_s9, 4  ;;  %s399_s7 = int_to_ptr.vmem [resolvable:$true] %s398_s7 }
 0x349   : > { %s835_s15 = scalar_lea.hbm %s889_s3, %s511_s4  ;;  %s383_s8 = scalar_lea.sflag [#allocation6], %s226_s29 }
 0x34a   : > { %s611_s10 = scalar_lea.vmem %s399_s7, 128  ;;  %s712_s11 = smov [#allocation5]  }
 0x34b   : > { %p612_p1 = scmp.ne.s32.totalorder %s399_s7, %s611_s10  ;;  %s615_s20 = sshll.u32 %s712_s11, 4  ;;  %s616_s20 = int_to_ptr.vmem [resolvable:$false] %s615_s20 }
 0x34c   : > { %s617_s21 = scalar_lea.vmem %s616_s20, 256  ;;  %p618_p5 = scmp.lt.s32.totalorder %s399_s7, %s616_s20 }
 0x34d   : > { %p613_p2 = pnand %p612_p1, %p782_p3  ;;  %p619_p6 = scmp.lt.s32.totalorder %s617_s21, %s611_s10 }
 0x34f   : > { %p614_p4 = pneg %p613_p2  ;;  %p620_p7 = por %p619_p6, %p618_p5 }
 0x351   : > { %p621_p8 = pnand %p620_p7, %p614_p4 }
 0x353   : > { %624 = shalt.err (!%p621_p8)
}
 0x354   : > { %s625_s16 = scalar_lea.hbm %s835_s15, 128  ;;  %s629_s9 = scalar_lea.hbm %s889_s3, 256 }
 0x355   : > { %p626_p10 = scmp.ne.s32.totalorder %s835_s15, %s625_s16  ;;  %p630_p13 = scmp.lt.u32.totalorder %s835_s15, %s889_s3 }
 0x356   : > { %p631_p0 = scmp.lt.u32.totalorder %s629_s9, %s625_s16  ;;  %p633_p2 = scmp.lt.u32.totalorder %s625_s16, %s835_s15 }
 0x357   : > { %p627_p11 = pnand %p626_p10, %p782_p3 }
 0x358   : > { %p632_p1 = por %p631_p0, %p630_p13 }
 0x359   : > { %p628_p12 = pneg %p627_p11 }
 0x35a   : > { %p634_p4 = por %p633_p2, %p632_p1 }
 0x35c   : > { %p635_p5 = pnand %p634_p4, %p628_p12 }
 0x35e   : > { %638 = shalt.err (!%p635_p5)
}
 0x35f   : > { %525 = dma.vmem_to_hbm [thread:$0]  (%p782_p3), %s399_s7, 128, %s835_s15, %s383_s8  }
 0x360 PF: > { %p531_p6 = scmp.ge.s32.totalorder %s705_s19, 2  ;;  %s410_s4 = sand.u32 1, %s677_s12  }
 0x361   : > { %s411_s5 = scalar_lea.sflag [#allocation6], %s410_s4 }
 0x362   : > { %p528_p7 = pnand %p531_p6, %p792_p9 }
 0x364   : > { %672 = dma.done.wait (!%p528_p7), %s411_s5, 128  }
 0x365   : > { %674 = vsyncadd (!%p528_p7), %s411_s5, 4294967168  ;;  %s16_s19 = sadd.s32 1, %s705_s19   ;;  %s892_s12 = smov %s681_s13 }
 0x366   : > { %p13_p8 = scmp.ge.s32.totalorder %s16_s19, 6   ;;  %s893_s13 = smov %s685_s14 }
 0x367   : > { %s894_s14 = smov %s800_s28  ;;  %s895_s15 = smov %s697_s17 }
 0x368   : > { %s896_s16 = smov %s701_s18  ;;  %s897_s17 = smov %s900_s22 }
 0x369   : > { %s898_s18 = smov %s904_s23  ;;  %15 = sbr.rel (!%p13_p8) target bundleno = 5 (0x5), region = 91 }
 0x370   :  { %416 = vsyncpa [#allocation6], 1 }
 0x371   :  { %418 = vsyncpa [#allocation6 + $0x1], 1 }

</bundles_post_ra>
